<compile_context>
chip_gen: v6e
topology: v6e:2x2x1
jax: 0.10.0
libtpu: 0.0.40
codegen_flags: <defaults>
</compile_context>

<pallas_src>
import math

import jax
import jax.numpy as jnp
import numpy as np
from jax import lax
from jax.experimental import pallas as pl
from jax.experimental.pallas import tpu as pltpu


# ----------------------------------------------------------------------------
# Bicubic taps (identical to the PyTorch __init__)
# ----------------------------------------------------------------------------
def bicubic_kernel_1d(factor, a=-0.5):
    size = factor * 4

    def kval(x):
        ax = abs(x)
        if ax <= 1.0:
            return (a + 2.0) * ax ** 3 - (a + 3.0) * ax ** 2 + 1.0
        elif 1.0 < ax < 2.0:
            return a * ax ** 3 - 5.0 * a * ax ** 2 + 8.0 * a * ax - 4.0 * a
        else:
            return 0.0

    k = [kval((i - math.floor(size / 2) + 0.5) / factor) for i in range(size)]
    s = sum(k)
    return [v / s for v in k]


def _pad_index(p, n, mode):
    """Map padded-coordinate index p to an index of the unpadded axis."""
    if mode == "reflect":
        if n == 1:
            return 0
        period = 2 * (n - 1)
        p = p % period
        if p >= n:
            p = period - p
        return p
    elif mode in ("replicate", "edge"):
        return min(max(p, 0), n - 1)
    else:
        raise ValueError(f"unsupported padding mode: {mode}")


def _folded_weight_matrix(n_in, factor, padding="reflect"):
    """Constant (n_out, n_in) matrix: strided bicubic taps with padding folded in."""
    size = factor * 4
    stride = factor
    pad = max(size - stride, 0)
    pad_lo = pad // 2
    k = bicubic_kernel_1d(factor)
    n_out = (n_in + pad - size) // stride + 1
    wm = np.zeros((n_out, n_in), dtype=np.float32)
    for r in range(n_out):
        for t in range(size):
            i = _pad_index(r * stride + t - pad_lo, n_in, padding)
            wm[r, i] += k[t]
    return wm


# ----------------------------------------------------------------------------
# Fused Pallas kernel:  out[c] = clip?(Wv @ clip?(x[c])  ... ) -- see body
# ----------------------------------------------------------------------------
def _make_fused_kernel(clip_round):
    def kernel(wv_ref, wht_ref, x_ref, o_ref, acc_ref):
        j = pl.program_id(1)

        @pl.when(j == 0)
        def _init():
            acc_ref[...] = jnp.zeros_like(acc_ref)

        # Vertical pass (strided conv along H) as one MXU matmul on this W tile.
        y = jnp.dot(wv_ref[...], x_ref[0],
                    preferred_element_type=jnp.float32)          # (h_out, wt)
        if clip_round:
            y = jnp.clip(jnp.round(y), 0.0, 255.0)
        # Horizontal pass: accumulate partial (h_out, w_out) contribution.
        acc_ref[...] += jnp.dot(y, wht_ref[...],
                                preferred_element_type=jnp.float32)

        @pl.when(j == pl.num_programs(1) - 1)
        def _finalize():
            z = acc_ref[...]
            if clip_round:
                z = jnp.clip(jnp.round(z), 0.0, 255.0)
            o_ref[0] = z.astype(o_ref.dtype)

    return kernel


def _choose_w_tile(H, W, budget_bytes=6 * 1024 * 1024):
    """Lane-aligned W tile whose double-buffered input block fits the budget."""
    if W <= 256:
        return W
    max_wt = max(128, (budget_bytes // (2 * H * 4)) // 128 * 128)
    wt = min(W, (max_wt // 128) * 128)
    while wt >= 128:
        if W % wt == 0:
            return wt
        wt -= 128
    return W  # fall back to a single full-width tile


def bicubic_downsample(x, factor=4, nhwc=False, clip_round=False,
                       byte_output=False, padding="reflect"):
    """Forward pass of BicubicDownSample (NCHW unless nhwc=True)."""
    if nhwc:
        x = jnp.transpose(x, (0, 3, 1, 2))
    x = x.astype(jnp.float32)
    N, C, H, W = x.shape

    wv = jnp.asarray(_folded_weight_matrix(H, factor, padding))       # (h_out, H)
    wh = _folded_weight_matrix(W, factor, padding)                    # (w_out, W)
    wht = jnp.asarray(np.ascontiguousarray(wh.T))                     # (W, w_out)
    h_out = wv.shape[0]
    w_out = wht.shape[1]

    NC = N * C
    xr = x.reshape(NC, H, W)
    w_tile = _choose_w_tile(H, W)
    n_wt = W // w_tile

    out = pl.pallas_call(
        _make_fused_kernel(clip_round),
        out_shape=jax.ShapeDtypeStruct((NC, h_out, w_out), jnp.float32),
        grid=(NC, n_wt),
        in_specs=[
            pl.BlockSpec((h_out, H), lambda c, j: (0, 0)),            # Wv (whole)
            pl.BlockSpec((w_tile, w_out), lambda c, j: (j, 0)),       # Wh^T tile
            pl.BlockSpec((1, H, w_tile), lambda c, j: (c, 0, j)),     # image tile
        ],
        out_specs=pl.BlockSpec((1, h_out, w_out), lambda c, j: (c, 0, 0)),
        scratch_shapes=[pltpu.VMEM((h_out, w_out), jnp.float32)],
        compiler_params=pltpu.CompilerParams(
            dimension_semantics=("parallel", "arbitrary")),
    )(wv, wht, xr)

    out = out.reshape(N, C, h_out, w_out)
    if nhwc:
        out = jnp.transpose(out, (0, 2, 3, 1))
    if byte_output:
        out = out.astype(jnp.uint8)
    return out


# ----------------------------------------------------------------------------
# Pure-JAX reference mirroring the PyTorch forward (lax depthwise conv)
# ----------------------------------------------------------------------------
def reference(x, factor=4, padding="reflect"):
    size = factor * 4
    stride = factor
    k = np.array(bicubic_kernel_1d(factor), dtype=np.float32)
    f1 = jnp.asarray(np.tile(k.reshape(1, 1, size, 1), (3, 1, 1, 1)))
    f2 = jnp.asarray(np.tile(k.reshape(1, 1, 1, size), (3, 1, 1, 1)))
    pad = size - stride
    pt, pb = pad // 2, pad - pad // 2
    xp = jnp.pad(x.astype(jnp.float32),
                 ((0, 0), (0, 0), (pt, pb), (0, 0)), mode=padding)
    y = lax.conv_general_dilated(
        xp, f1, window_strides=(stride, 1), padding="VALID",
        feature_group_count=3, dimension_numbers=("NCHW", "OIHW", "NCHW"))
    yp = jnp.pad(y, ((0, 0), (0, 0), (0, 0), (pt, pb)), mode=padding)
    z = lax.conv_general_dilated(
        yp, f2, window_strides=(1, stride), padding="VALID",
        feature_group_count=3, dimension_numbers=("NCHW", "OIHW", "NCHW"))
    return z


if __name__ == "__main__":
    key = jax.random.PRNGKey(0)
    # groups=3 in the PyTorch module -> exactly 3 channels.
    x = jax.random.uniform(key, (2, 3, 16, 16), dtype=jnp.float32) * 255.0

    out = jax.block_until_ready(bicubic_downsample(x, factor=4))
    ref = jax.block_until_ready(reference(x, factor=4))

    assert out.shape == (2, 3, 4, 4), out.shape
    np.testing.assert_allclose(np.asarray(out), np.asarray(ref),
                               rtol=1e-5, atol=1e-4)
    print("KERNEL_OK")
</pallas_src>

<mosaic_0001>
module attributes {stable_mosaic.version = 11 : i64} {
  func.func @kernel(%arg0: i32, %arg1: i32, %arg2: memref<4x16xf32, #tpu.memory_space<vmem>>, %arg3: memref<16x4xf32, #tpu.memory_space<vmem>>, %arg4: memref<1x16x16xf32, #tpu.memory_space<vmem>>, %arg5: memref<1x4x4xf32, #tpu.memory_space<vmem>>, %arg6: memref<4x4xf32, #tpu.memory_space<vmem>>) attributes {dimension_semantics = [#tpu.dimension_semantics<parallel>, #tpu.dimension_semantics<arbitrary>], iteration_bounds = array<i64: 6, 1>, scalar_prefetch = 0 : i64, scratch_operands = 1 : i64, tpu.core_type = #tpu.core_type<tc>, window_params = [{pipeline_mode = #tpu.pipeline_mode<synchronous>, transform_indices = @transform_0, window_bounds = array<i64: 4, 16>}, {transform_indices = @transform_1, window_bounds = array<i64: 16, 4>}, {transform_indices = @transform_2, window_bounds = array<i64: 1, 16, 16>}, {transform_indices = @transform_3, window_bounds = array<i64: 1, 4, 4>}]} {
    %c0_i32 = arith.constant 0 : i32
    %0 = arith.cmpi eq, %arg1, %c0_i32 : i32
    %1 = arith.extui %0 : i1 to i32
    %c0_i32_0 = arith.constant 0 : i32
    %2 = arith.cmpi ne, %1, %c0_i32_0 : i32
    scf.if %2 {
      %cst_14 = arith.constant 0.000000e+00 : f32
      %15 = vector.broadcast %cst_14 : f32 to vector<4x4xf32>
      %c0_15 = arith.constant 0 : index
      %c0_16 = arith.constant 0 : index
      %16 = vector.load %arg6[%c0_15, %c0_16] : memref<4x4xf32, #tpu.memory_space<vmem>>, vector<4x4xf32>
      tpu.vector_store %arg6[%c0_15, %c0_16], %15 {strides = array<i32>} : memref<4x4xf32, #tpu.memory_space<vmem>>, vector<4x4xf32>,
    } else {
    }
    %c0 = arith.constant 0 : index
    %c0_1 = arith.constant 0 : index
    %3 = vector.load %arg2[%c0, %c0_1] : memref<4x16xf32, #tpu.memory_space<vmem>>, vector<4x16xf32>
    %c0_2 = arith.constant 0 : index
    %c0_3 = arith.constant 0 : index
    %c0_4 = arith.constant 0 : index
    %4 = vector.load %arg4[%c0_2, %c0_3, %c0_4] : memref<1x16x16xf32, #tpu.memory_space<vmem>>, vector<1x16x16xf32>
    %5 = vector.shape_cast %4 : vector<1x16x16xf32> to vector<16x16xf32>
    %cst = arith.constant dense<0.000000e+00> : vector<4x16xf32>
    %6 = tpu.matmul %3, %5, %cst {dimension_numbers = #tpu.dot_dimension_numbers<[1], [0], [0], [1], [0, 0, 1, 1], [], []>} : vector<4x16xf32>, vector<16x16xf32>, vector<4x16xf32> -> vector<4x16xf32>
    %c0_5 = arith.constant 0 : index
    %c0_6 = arith.constant 0 : index
    %7 = vector.load %arg6[%c0_5, %c0_6] : memref<4x4xf32, #tpu.memory_space<vmem>>, vector<4x4xf32>
    %c0_7 = arith.constant 0 : index
    %c0_8 = arith.constant 0 : index
    %8 = vector.load %arg3[%c0_7, %c0_8] : memref<16x4xf32, #tpu.memory_space<vmem>>, vector<16x4xf32>
    %cst_9 = arith.constant dense<0.000000e+00> : vector<4x4xf32>
    %9 = tpu.matmul %6, %8, %cst_9 {dimension_numbers = #tpu.dot_dimension_numbers<[1], [0], [0], [1], [0, 0, 1, 1], [], []>} : vector<4x16xf32>, vector<16x4xf32>, vector<4x4xf32> -> vector<4x4xf32>
    %10 = arith.addf %7, %9 : vector<4x4xf32>
    %c0_10 = arith.constant 0 : index
    %c0_11 = arith.constant 0 : index
    %11 = vector.load %arg6[%c0_10, %c0_11] : memref<4x4xf32, #tpu.memory_space<vmem>>, vector<4x4xf32>
    tpu.vector_store %arg6[%c0_10, %c0_11], %10 {strides = array<i32>} : memref<4x4xf32, #tpu.memory_space<vmem>>, vector<4x4xf32>,
    %c0_i32_12 = arith.constant 0 : i32
    %12 = arith.cmpi eq, %arg1, %c0_i32_12 : i32
    %13 = arith.extui %12 : i1 to i32
    %c0_i32_13 = arith.constant 0 : i32
    %14 = arith.cmpi ne, %13, %c0_i32_13 : i32
    scf.if %14 {
      %c0_14 = arith.constant 0 : index
      %c0_15 = arith.constant 0 : index
      %15 = vector.load %arg6[%c0_14, %c0_15] : memref<4x4xf32, #tpu.memory_space<vmem>>, vector<4x4xf32>
      %c0_16 = arith.constant 0 : index
      %c0_17 = arith.constant 0 : index
      %c0_18 = arith.constant 0 : index
      %16 = vector.load %arg5[%c0_16, %c0_17, %c0_18] : memref<1x4x4xf32, #tpu.memory_space<vmem>>, vector<1x4x4xf32>
      %17 = vector.shape_cast %16 : vector<1x4x4xf32> to vector<4x4xf32>
      %18 = vector.shape_cast %15 : vector<4x4xf32> to vector<1x4x4xf32>
      tpu.vector_store %arg5[%c0_16, %c0_17, %c0_18], %18 {strides = array<i32>} : memref<1x4x4xf32, #tpu.memory_space<vmem>>, vector<1x4x4xf32>,
    } else {
    }
    return
  }
  func.func @transform_0(%arg0: i32, %arg1: i32) -> (i32, i32) {
    %c0_i32 = arith.constant 0 : i32
    %c0_i32_0 = arith.constant 0 : i32
    %c0_i32_1 = arith.constant 0 : i32
    return %c0_i32, %c0_i32_0 : i32, i32
  }
  func.func @transform_1(%arg0: i32, %arg1: i32) -> (i32, i32) {
    %c0_i32 = arith.constant 0 : i32
    %c0_i32_0 = arith.constant 0 : i32
    return %arg1, %c0_i32 : i32, i32
  }
  func.func @transform_2(%arg0: i32, %arg1: i32) -> (i32, i32, i32) {
    %c0_i32 = arith.constant 0 : i32
    %c0_i32_0 = arith.constant 0 : i32
    return %arg0, %c0_i32, %arg1 : i32, i32, i32
  }
  func.func @transform_3(%arg0: i32, %arg1: i32) -> (i32, i32, i32) {
    %c0_i32 = arith.constant 0 : i32
    %c0_i32_0 = arith.constant 0 : i32
    %c0_i32_1 = arith.constant 0 : i32
    return %arg0, %c0_i32, %c0_i32_0 : i32, i32, i32
  }
}

</mosaic_0001>

<bundles_post_ra>
// kernel: tpu_custom_call.1
= control target key start
LH: loop header
LB: loop body
LE: loop exit
PB: predicated region body
PF: predicated region fallthrough
CT: control target
= control target key end

     0   :  { %8 = vsyncpa [#allocation4], 0  ;;  %s788_s0 = inlined_call_operand.vmem [shape: f32[4,16], index: 0, kind: input, shape index: {}]   ;;  %s789_s1 = inlined_call_operand.vmem [shape: f32[16,4], index: 1, kind: input, shape index: {}]   ;;  %s790_s2 = inlined_call_operand.hbm [shape: f32[6,16,16], index: 2, kind: input, shape index: {}]   ;;  %s791_s3 = inlined_call_operand.vmem [shape: f32[6,4,4], index: 3, kind: output, shape index: {}]  }
   0x1   :  { %10 = vsyncpa [#allocation4 + $0x1], 0  ;;  %s683_s12 = smov 0   ;;  %s685_s13 = smov 0  }
   0x2   :  { %s687_s14 = smov 0   ;;  %s689_s15 = smov 0  }
   0x3   :  { %s691_s16 = smov 0   ;;  %s693_s17 = smov 0  }
   0x4 LB: > { %s483_s18 = sadd.s32 4294967295, %s656_s17   ;;  %s28_s19 = sadd.s32 1, %s652_s16  ;;  %s656_s17 = sphi %s693_s17, %s16_s17   ;;  %s652_s16 = sphi %s691_s16, %s799_s16   ;;  %s648_s15 = sphi %s689_s15, %s798_s15   ;;  %s644_s14 = sphi %s687_s14, %s797_s14   ;;  %s640_s13 = sphi %s685_s13, %s796_s13   ;;  %s636_s12 = sphi %s683_s12, %s795_s12  }
   0x5   : > { %p30_p0 = scmp.ge.s32.totalorder %s28_s19, 6  ;;  %s84_s20 = sadd.s32 1, %s644_s14 }
   0x6   : > { %p91_p1 = scmp.ne.s32.totalorder %s644_s14, %s640_s13  ;;  %p92_p2 = scmp.eq.s32.totalorder %s656_s17, 0 }
   0x7   : > { %s801_s19 = smov (%p30_p0, %s28_s19), 0  ;;  %p97_p4 = scmp.ne.s32.totalorder %s640_s13, %s636_s12 }
   0x8   : > { %p719_p3 = por %p92_p2, %p91_p1  ;;  %s79_s22 = ssub.s32 %s652_s16, %s801_s19 }
   0x9   : > { %p98_p5 = scmp.eq.s32.totalorder %s483_s18, 0  ;;  %p82_p6 = scmp.eq.s32.totalorder %s79_s22, 0 }
   0xa   : > { %p525_p8 = scmp.lt.s32.totalorder %s656_s17, 6  ;;  %s159_s25 = sand.u32 1, %s644_s14  }
   0xb   : > { %p726_p7 = por %p98_p5, %p97_p4  ;;  %s498_s26 = sshll.u32 %s652_s16, 8 }
   0xc   : > { %s732_s24 = scalar_select %p82_p6, %s644_s14, %s84_s20  }
   0xd   : > { %s488_s27 = sshll.u32 %s159_s25, 4  ;;  %s170_s30 = scalar_lea.hbm %s790_s2, %s498_s26 }
   0xe   : > { %s163_s4 = scalar_lea.vmem [#allocation3], %s488_s27  ;;  %p741_p9 = pnand %p525_p8, %p719_p3 }
   0xf   : > { %s171_s5 = sshll.u32 %s163_s4, 4  ;;  %s160_s7 = scalar_lea.sflag [#allocation4], %s159_s25  ;;  %s172_s5 = int_to_ptr.vmem [resolvable:$true] %s171_s5 }
  0x10   : > { %p580_p10 = pneg %p741_p9  ;;  %s591_s8 = scalar_lea.vmem %s172_s5, 256 }
  0x11   : > { %p592_p11 = scmp.ne.s32.totalorder %s172_s5, %s591_s8  ;;  %s658_s9 = smov [#allocation3]  }
  0x12   : > { %s596_s10 = sshll.u32 %s658_s9, 4  ;;  %s597_s10 = int_to_ptr.vmem [resolvable:$false] %s596_s10 }
  0x13   : > { %p594_p12 = pnand %p592_p11, %p580_p10  ;;  %s598_s11 = scalar_lea.vmem %s597_s10, 512 }
  0x14   : > { %p599_p0 = scmp.lt.s32.totalorder %s172_s5, %s597_s10  ;;  %p600_p1 = scmp.lt.s32.totalorder %s598_s11, %s591_s8 }
  0x15   : > { %p595_p13 = pneg %p594_p12 }
  0x16   : > { %p601_p2 = por %p600_p1, %p599_p0 }
  0x18   : > { %p602_p3 = pnand %p601_p2, %p595_p13 }
  0x1a   : > { %605 = shalt.err (!%p602_p3)
}
  0x1b   : > { %s659_s12 = smov 128   ;;  %s660_s18 = smov 8  }
  0x1c   : > { %524 = dma.hbm_to_vmem [thread:$0]  (!%p741_p9), %s170_s30, 256, %s172_s5, %s160_s7, %s659_s12, %s659_s12, %s660_s18  }
  0x1d   : > { %p491_p4 = scmp.ge.s32.totalorder %s656_s17, 1  ;;  %p179_p5 = scmp.lt.s32.totalorder %s656_s17, 7 }
  0x1f   : > { %p180_p6 = pnand %p491_p4, %p179_p5 }
  0x20   : > { %s185_s20 = sand.u32 (!%p180_p6), 1, %s640_s13  }
  0x21   : > { %183 = sbr.rel (%p180_p6) target bundleno = 442 (0x1ba), region = 32  ;;  %s492_s21 = sshll.u32 (!%p180_p6), %s185_s20, 4 }
  0x22   : > { %s186_s22 = scalar_lea.sflag (!%p180_p6), [#allocation4], %s185_s20  ;;  %s189_s25 = scalar_lea.vmem (!%p180_p6), [#allocation3], %s492_s21 }
  0x26   : > { %631 = dma.done.wait (%p726_p7), %s186_s22, 256  }
  0x27   : > { %633 = vsyncadd (%p726_p7), %s186_s22, 4294967040  ;;  %v661_v0 = vmov 0.0   ;;  %vm662_vm0 = vmmov 0   ;;  %v234_v1 = vld [vmem:[%s189_s25 + $0x8] sm:$0xff]  ;;  %v233_v2 = vld [vmem:[%s189_s25] sm:$0xff]  ;;  %vm235_vm1 = vcmask 130048  }
  0x28   : > { %505 = vmatprep.subr.mxu0 %v661_v0  ;;  %509 = vmatprep.mubr.msk.f32.mxu0 %vm662_vm0, %v661_v0  ;;  %v232_v3 = vld [vmem:[%s788_s0] sm:$0xf]  ;;  %v311_v4 = vld [vmem:[%s789_s1 + $0x8] sm:$0xff]  ;;  %vm230_vm2 = vcmask 27648   ;;  %p222_p7 = scmp.lt.s32.totalorder %s648_s15, 5 }
  0x29   : > { %512 = vmatprep.subr.mxu1 %v661_v0  ;;  %516 = vmatprep.mubr.msk.f32.mxu1 %vm662_vm0, %v661_v0  ;;  %v310_v5 = vld [vmem:[%s789_s1] sm:$0xff]  ;;  %231 = vst.msk [vmem:[#allocation2] sm:$0xf] %vm230_vm2, %v661_v0 }
  0x2a   : > { %506 = vmatpush3.msra.mxu0 %v234_v1  ;;  %513 = vmatpush3.msra.mxu1 %v311_v4  ;;  %s803_s15 = smov (!%p222_p7, %s648_s15), 5 }
  0x2b   : > { %507 = vmatprep.subr.mxu0 %v661_v0  ;;  %514 = vmatprep.subr.mxu1 %v661_v0  ;;  %s493_s4 = sshll.u32 %s803_s15, 2 }
  0x2c   : > { %508 = vmatpush3.msra.mxu0 %v233_v2  ;;  %515 = vmatpush3.msra.mxu1 %v310_v5  ;;  %s225_s7 = scalar_lea.vmem %s791_s3, %s493_s4 }
  0x2d   : > { %510 = vmatmul.mubr.msk.f32.vlgmr.msra.gmra.mxu0 %vm235_vm1, %v232_v3 }
  0x30   : > { %v309_v8 = vld [vmem:[#allocation2] sm:$0xf] }
  0xed   : > { %v305_v6 = vpop.f32.mrf.mxu0 }
  0xee   : > { %517 = vmatmul.mubr.msk.f32.vlgmr.msra.gmra.mxu1 %vm235_vm1, %v305_v6 }
  0xef   : > { %v511_v7 = vpop.f32.mrf.mxu0 }
 0x1ae   : > { %v381_v9 = vpop.f32.mrf.mxu1 }
 0x1af   : > { %v385_v10 = vadd.f32 %v381_v9, %v309_v8 }
 0x1b0   : > { %v518_v11 = vpop.f32.mrf.mxu1 }
 0x1b1   : > { %387 = vst.msk [vmem:[#allocation2] sm:$0xf] %vm230_vm2, %v385_v10 }
 0x1b8   : > { %v391_v12 = vld [vmem:[#allocation2] sm:$0xf] }
 0x1b9   : > { %392 = vst.msk [vmem:[%s225_s7] sm:$0xf] %vm230_vm2, %v391_v12 }
 0x1ba PF: > { %s16_s17 = sadd.s32 1, %s656_s17   ;;  %s795_s12 = smov %s640_s13 }
 0x1bb   : > { %p13_p8 = scmp.ge.s32.totalorder %s16_s17, 8   ;;  %s796_s13 = smov %s644_s14 }
 0x1bc   : > { %s797_s14 = smov %s732_s24  ;;  %s798_s15 = smov %s652_s16 }
 0x1bd   : > { %s799_s16 = smov %s801_s19  ;;  %15 = sbr.rel (!%p13_p8) target bundleno = 4 (0x4), region = 83 }
 0x1c2   :  { %412 = vsyncpa [#allocation4], 1 }
 0x1c3   :  { %414 = vsyncpa [#allocation4 + $0x1], 1 }

</bundles_post_ra>
